<compile_context>
chip_gen: v7x
topology: tpu7x:2x2x1
jax: 0.10.0
libtpu: 0.0.40
codegen_flags: <defaults>
</compile_context>

<pallas_src>
import jax
import jax.numpy as jnp
import numpy as np
from jax import lax
from jax.experimental import pallas as pl
from jax.experimental.pallas import tpu as pltpu

EPS = 1e-6


def _ceil_to(x, m):
    return ((x + m - 1) // m) * m


def _make_kernel(d_o):
    """d_o is the true output width; lane index d_o of the 128-padded output
    carries the attention scalar a = w(h) + bw (and, accumulated, a_sum)."""

    def kernel(h_ref, mtgt_ref, w_ref, o_ref):
        e = pl.program_id(1)

        @pl.when(e == 0)
        def _init():
            o_ref[...] = jnp.zeros_like(o_ref)

        # Fused edge-side matmul (bias folded via the constant-1 column of h):
        #   z[:, :d_o] = f(h) + bf ,  z[:, d_o] = w(h) + bw ,  rest = 0.
        z = jnp.dot(h_ref[...], w_ref[...], preferred_element_type=jnp.float32)

        col_e = lax.broadcasted_iota(jnp.int32, z.shape, 1)
        # a = z[:, d_o] as a per-row lane reduce (XLU), kept broadcastable.
        a = jnp.sum(jnp.where(col_e == d_o, z, 0.0), axis=-1, keepdims=True)
        # p[:, :d_o] = relu(z[:, :d_o]) * a ; p[:, d_o] = a ; padding cols = 0.
        p = jnp.where(col_e == d_o, a, jnp.maximum(z, 0.0) * a)

        # Node-side matmul on the single-pass bf16 MXU path:
        #   int8 0/1 Mtgt -> bf16 (exact), p -> bf16, f32 accumulation.
        mtgt = mtgt_ref[...].astype(jnp.bfloat16)
        o_ref[...] += jnp.dot(mtgt, p.astype(jnp.bfloat16),
                              preferred_element_type=jnp.float32)

        @pl.when(e == pl.num_programs(1) - 1)
        def _finalize():
            acc = o_ref[...]
            col_n = lax.broadcasted_iota(jnp.int32, acc.shape, 1)
            a_sum = jnp.sum(jnp.where(col_n == d_o, acc, 0.0),
                            axis=-1, keepdims=True) + EPS
            # Exact divide (not pl.reciprocal approx): a_sum can be ~0.
            o_ref[...] = acc / a_sum

    return kernel


def gat_layer_edge_average(x, src, tgt, Mtgt, wf, bf, ww, bw,
                           *, tile_n=2048, tile_e=1024):
    """x:(N,d_i), src/tgt:(E,), Mtgt:(N,E) 0/1, wf:(2*d_i,d_o), bf:(d_o,),
    ww:(2*d_i,1), bw:(1,). Returns (N, d_o). Weights stored pre-transposed as
    (in_features, out_features)."""
    N, d_i = x.shape
    E = src.shape[0]
    d_o = wf.shape[1]
    feat = 2 * d_i + 1                       # +1: constant column for biases
    d_pad = _ceil_to(d_o + 1, 128)           # lane-dense output width

    # int8 Mtgt block => second-to-last dim must be a multiple of 32.
    tile_n = min(tile_n, _ceil_to(N, 32))
    tile_e = min(tile_e, _ceil_to(E, 128))
    N_pad = _ceil_to(N, tile_n)
    E_pad = _ceil_to(E, tile_e)

    # Glue: gather + concat + ones column (edge feature assembly). Padded edge
    # rows are all-zero (ones column included) -> contribute exactly zero.
    hsrc = jnp.take(x, src, axis=0).astype(jnp.float32)      # (E, d_i)
    htgt = jnp.take(x, tgt, axis=0).astype(jnp.float32)      # (E, d_i)
    h = jnp.concatenate([hsrc, htgt, jnp.ones((E, 1), jnp.float32)], axis=1)
    if E_pad != E:
        h = jnp.pad(h, ((0, E_pad - E), (0, 0)))

    # Mtgt is exactly 0/1: stream it as int8 (dominant HBM term). Avoid
    # re-materializing when the caller already provides int8 / padded data.
    mtgt = Mtgt if Mtgt.dtype == jnp.int8 else Mtgt.astype(jnp.int8)
    if mtgt.shape != (N_pad, E_pad):
        mtgt = jnp.pad(mtgt, ((0, N_pad - N), (0, E_pad - E)))

    # Fuse f and w (and both biases) into one lane-dense weight:
    # column d_o of the padded lane axis carries the attention projection.
    w_comb = jnp.zeros((feat, d_pad), jnp.float32)
    w_comb = w_comb.at[:2 * d_i, :d_o].set(wf.astype(jnp.float32))
    w_comb = w_comb.at[:2 * d_i, d_o].set(ww[:, 0].astype(jnp.float32))
    w_comb = w_comb.at[2 * d_i, :d_o].set(bf.astype(jnp.float32))
    w_comb = w_comb.at[2 * d_i, d_o].set(bw[0].astype(jnp.float32))

    grid = (N_pad // tile_n, E_pad // tile_e)

    out = pl.pallas_call(
        _make_kernel(d_o),
        out_shape=jax.ShapeDtypeStruct((N_pad, d_pad), jnp.float32),
        grid_spec=pltpu.PrefetchScalarGridSpec(
            num_scalar_prefetch=0,
            grid=grid,
            in_specs=[
                pl.BlockSpec((tile_e, feat), lambda n, e: (e, 0)),    # h
                pl.BlockSpec((tile_n, tile_e), lambda n, e: (n, e)),  # Mtgt i8
                pl.BlockSpec((feat, d_pad), lambda n, e: (0, 0)),     # W_comb
            ],
            out_specs=pl.BlockSpec((tile_n, d_pad), lambda n, e: (n, 0)),
        ),
        compiler_params=pltpu.CompilerParams(
            dimension_semantics=("parallel", "arbitrary")),
    )(h, mtgt, w_comb)

    return out[:N, :d_o]


def xavier_uniform(key, shape):
    # shape = (fan_in, fan_out) since the weight is stored pre-transposed.
    fan_in, fan_out = shape
    bound = float(np.sqrt(6.0 / (fan_in + fan_out)))
    return jax.random.uniform(key, shape, jnp.float32, -bound, bound)


def reference(x, src, tgt, Mtgt, wf, bf, ww, bw):
    hsrc = x[src]
    htgt = x[tgt]
    h = jnp.concatenate([hsrc, htgt], axis=1)
    y = jnp.maximum(h @ wf + bf, 0.0)
    a = h @ ww + bw
    Mt = Mtgt.astype(jnp.float32)
    a_sum = Mt @ a + EPS
    return (Mt @ (y * a)) / a_sum


if __name__ == "__main__":
    # Small synthetic graph.
    N, E, d_i, d_o = 16, 32, 8, 16

    key = jax.random.PRNGKey(0)
    kx, ksrc, ktgt, kwf, kbf, kww, kbw = jax.random.split(key, 7)

    x = jax.random.normal(kx, (N, d_i), jnp.float32)
    src = jax.random.randint(ksrc, (E,), 0, N, jnp.int32)
    tgt = jax.random.randint(ktgt, (E,), 0, N, jnp.int32)

    # Mtgt[n, e] = 1 if tgt[e] == n (target-node-to-edge incidence matrix),
    # built directly in int8 (exact 0/1) so no wrapper-side re-materialization.
    Mtgt = (jnp.arange(N)[:, None] == tgt[None, :]).astype(jnp.int8)

    # Parameters: f: Linear(2*d_i, d_o), w: Linear(2*d_i, 1).
    fan_in = 2 * d_i
    b_bound = 1.0 / float(np.sqrt(fan_in))
    wf = xavier_uniform(kwf, (fan_in, d_o))
    bf = jax.random.uniform(kbf, (d_o,), jnp.float32, -b_bound, b_bound)
    # Attention weights scaled down + positive bias so a (hence a_sum) is
    # bounded away from zero: near-zero a_sum amplifies any rounding and would
    # make the bf16-node-matmul vs f32-reference comparison ill-conditioned.
    ww = 0.1 * xavier_uniform(kww, (fan_in, 1))
    bw = jnp.array([1.0], jnp.float32)

    out = gat_layer_edge_average(x, src, tgt, Mtgt, wf, bf, ww, bw)
    out = jax.block_until_ready(out)

    ref = reference(x, src, tgt, Mtgt, wf, bf, ww, bw)
    assert out.shape == (N, d_o)
    assert not bool(jnp.isnan(out).any())
    # p (=[y*a | a]) is cast to bf16 for the single-pass MXU node matmul;
    # accumulation stays f32, so expect ~1e-3..1e-2 relative deviation.
    np.testing.assert_allclose(np.asarray(out), np.asarray(ref),
                               rtol=2e-2, atol=2e-2)
    print("KERNEL_OK")
</pallas_src>

<mosaic_0001>
module attributes {stable_mosaic.version = 11 : i64} {
  func.func @kernel(%arg0: i32, %arg1: i32, %arg2: memref<128x17xf32, #tpu.memory_space<vmem>>, %arg3: memref<32x128xi8, #tpu.memory_space<vmem>>, %arg4: memref<17x128xf32, #tpu.memory_space<vmem>>, %arg5: memref<32x128xf32, #tpu.memory_space<vmem>>) attributes {dimension_semantics = [#tpu.dimension_semantics<parallel>, #tpu.dimension_semantics<arbitrary>], iteration_bounds = array<i64: 1, 1>, scalar_prefetch = 0 : i64, scratch_operands = 0 : i64, tpu.core_type = #tpu.core_type<tc>, window_params = [{transform_indices = @transform_0, window_bounds = array<i64: 128, 17>}, {transform_indices = @transform_1, window_bounds = array<i64: 32, 128>}, {pipeline_mode = #tpu.pipeline_mode<synchronous>, transform_indices = @transform_2, window_bounds = array<i64: 17, 128>}, {transform_indices = @transform_3, window_bounds = array<i64: 32, 128>}]} {
    %c0_i32 = arith.constant 0 : i32
    %0 = arith.cmpi eq, %arg1, %c0_i32 : i32
    %1 = arith.extui %0 : i1 to i32
    %c0_i32_0 = arith.constant 0 : i32
    %2 = arith.cmpi ne, %1, %c0_i32_0 : i32
    scf.if %2 {
      %cst_17 = arith.constant 0.000000e+00 : f32
      %32 = vector.broadcast %cst_17 : f32 to vector<32x128xf32>
      %c0_18 = arith.constant 0 : index
      %c0_19 = arith.constant 0 : index
      %33 = vector.load %arg5[%c0_18, %c0_19] : memref<32x128xf32, #tpu.memory_space<vmem>>, vector<32x128xf32>
      tpu.vector_store %arg5[%c0_18, %c0_19], %32 {strides = array<i32>} : memref<32x128xf32, #tpu.memory_space<vmem>>, vector<32x128xf32>,
    } else {
    }
    %c0 = arith.constant 0 : index
    %c0_1 = arith.constant 0 : index
    %3 = vector.load %arg2[%c0, %c0_1] : memref<128x17xf32, #tpu.memory_space<vmem>>, vector<128x17xf32>
    %c0_2 = arith.constant 0 : index
    %c0_3 = arith.constant 0 : index
    %4 = vector.load %arg4[%c0_2, %c0_3] : memref<17x128xf32, #tpu.memory_space<vmem>>, vector<17x128xf32>
    %cst = arith.constant dense<0.000000e+00> : vector<128x128xf32>
    %5 = tpu.matmul %3, %4, %cst {dimension_numbers = #tpu.dot_dimension_numbers<[1], [0], [0], [1], [0, 0, 1, 1], [], []>} : vector<128x17xf32>, vector<17x128xf32>, vector<128x128xf32> -> vector<128x128xf32>
    %6 = tpu.iota {dimensions = array<i32: 1>} : vector<128x128xi32>
    %c16_i32 = arith.constant 16 : i32
    %7 = vector.broadcast %c16_i32 : i32 to vector<128x128xi32>
    %8 = arith.cmpi eq, %6, %7 : vector<128x128xi32>
    %cst_4 = arith.constant 0.000000e+00 : f32
    %9 = vector.broadcast %cst_4 : f32 to vector<128x128xf32>
    %10 = arith.select %8, %5, %9 : vector<128x128xi1>, vector<128x128xf32>
    %cst_5 = arith.constant dense<0.000000e+00> : vector<128xf32>
    %11 = vector.multi_reduction <add>, %10, %cst_5 [1] : vector<128x128xf32> to vector<128xf32>
    %12 = vector.shape_cast %11 : vector<128xf32> to vector<128x1xf32>
    %c16_i32_6 = arith.constant 16 : i32
    %13 = vector.broadcast %c16_i32_6 : i32 to vector<128x128xi32>
    %14 = arith.cmpi eq, %6, %13 : vector<128x128xi32>
    %cst_7 = arith.constant 0.000000e+00 : f32
    %15 = vector.broadcast %cst_7 : f32 to vector<128x128xf32>
    %16 = arith.maximumf %5, %15 : vector<128x128xf32>
    %17 = vector.broadcast %12 : vector<128x1xf32> to vector<128x128xf32>
    %18 = arith.mulf %16, %17 : vector<128x128xf32>
    %19 = vector.shape_cast %12 : vector<128x1xf32> to vector<128x1xf32>
    %20 = vector.broadcast %19 : vector<128x1xf32> to vector<128x128xf32>
    %21 = arith.select %14, %20, %18 : vector<128x128xi1>, vector<128x128xf32>
    %c0_8 = arith.constant 0 : index
    %c0_9 = arith.constant 0 : index
    %22 = vector.load %arg3[%c0_8, %c0_9] : memref<32x128xi8, #tpu.memory_space<vmem>>, vector<32x128xi8>
    %23 = arith.sitofp %22 : vector<32x128xi8> to vector<32x128xbf16>
    %c0_10 = arith.constant 0 : index
    %c0_11 = arith.constant 0 : index
    %24 = vector.load %arg5[%c0_10, %c0_11] : memref<32x128xf32, #tpu.memory_space<vmem>>, vector<32x128xf32>
    %25 = arith.truncf %21 : vector<128x128xf32> to vector<128x128xbf16>
    %cst_12 = arith.constant dense<0.000000e+00> : vector<32x128xf32>
    %26 = tpu.matmul %23, %25, %cst_12 {dimension_numbers = #tpu.dot_dimension_numbers<[1], [0], [0], [1], [0, 0, 1, 1], [], []>} : vector<32x128xbf16>, vector<128x128xbf16>, vector<32x128xf32> -> vector<32x128xf32>
    %27 = arith.addf %24, %26 : vector<32x128xf32>
    %c0_13 = arith.constant 0 : index
    %c0_14 = arith.constant 0 : index
    %28 = vector.load %arg5[%c0_13, %c0_14] : memref<32x128xf32, #tpu.memory_space<vmem>>, vector<32x128xf32>
    tpu.vector_store %arg5[%c0_13, %c0_14], %27 {strides = array<i32>} : memref<32x128xf32, #tpu.memory_space<vmem>>, vector<32x128xf32>,
    %c0_i32_15 = arith.constant 0 : i32
    %29 = arith.cmpi eq, %arg1, %c0_i32_15 : i32
    %30 = arith.extui %29 : i1 to i32
    %c0_i32_16 = arith.constant 0 : i32
    %31 = arith.cmpi ne, %30, %c0_i32_16 : i32
    scf.if %31 {
      %c0_17 = arith.constant 0 : index
      %c0_18 = arith.constant 0 : index
      %32 = vector.load %arg5[%c0_17, %c0_18] : memref<32x128xf32, #tpu.memory_space<vmem>>, vector<32x128xf32>
      %33 = tpu.iota {dimensions = array<i32: 1>} : vector<32x128xi32>
      %c16_i32_19 = arith.constant 16 : i32
      %34 = vector.broadcast %c16_i32_19 : i32 to vector<32x128xi32>
      %35 = arith.cmpi eq, %33, %34 : vector<32x128xi32>
      %cst_20 = arith.constant 0.000000e+00 : f32
      %36 = vector.broadcast %cst_20 : f32 to vector<32x128xf32>
      %37 = arith.select %35, %32, %36 : vector<32x128xi1>, vector<32x128xf32>
      %cst_21 = arith.constant dense<0.000000e+00> : vector<32xf32>
      %38 = vector.multi_reduction <add>, %37, %cst_21 [1] : vector<32x128xf32> to vector<32xf32>
      %39 = vector.shape_cast %38 : vector<32xf32> to vector<32x1xf32>
      %cst_22 = arith.constant 9.99999997E-7 : f32
      %40 = vector.broadcast %cst_22 : f32 to vector<32x1xf32>
      %41 = arith.addf %39, %40 : vector<32x1xf32>
      %42 = vector.broadcast %41 : vector<32x1xf32> to vector<32x128xf32>
      %43 = arith.divf %32, %42 : vector<32x128xf32>
      %c0_23 = arith.constant 0 : index
      %c0_24 = arith.constant 0 : index
      %44 = vector.load %arg5[%c0_23, %c0_24] : memref<32x128xf32, #tpu.memory_space<vmem>>, vector<32x128xf32>
      tpu.vector_store %arg5[%c0_23, %c0_24], %43 {strides = array<i32>} : memref<32x128xf32, #tpu.memory_space<vmem>>, vector<32x128xf32>,
    } else {
    }
    return
  }
  func.func @transform_0(%arg0: i32, %arg1: i32) -> (i32, i32) {
    %c0_i32 = arith.constant 0 : i32
    %c0_i32_0 = arith.constant 0 : i32
    return %arg1, %c0_i32 : i32, i32
  }
  func.func @transform_1(%arg0: i32, %arg1: i32) -> (i32, i32) {
    %c0_i32 = arith.constant 0 : i32
    return %arg0, %arg1 : i32, i32
  }
  func.func @transform_2(%arg0: i32, %arg1: i32) -> (i32, i32) {
    %c0_i32 = arith.constant 0 : i32
    %c0_i32_0 = arith.constant 0 : i32
    %c0_i32_1 = arith.constant 0 : i32
    return %c0_i32, %c0_i32_0 : i32, i32
  }
  func.func @transform_3(%arg0: i32, %arg1: i32) -> (i32, i32) {
    %c0_i32 = arith.constant 0 : i32
    %c0_i32_0 = arith.constant 0 : i32
    return %arg0, %c0_i32 : i32, i32
  }
}

</mosaic_0001>

<bundles_post_ra>
// kernel: tpu_custom_call.1
= control target key start
LH: loop header
LB: loop body
LE: loop exit
PB: predicated region body
PF: predicated region fallthrough
CT: control target
= control target key end

     0   :  { %vm43_vm0 = vcmask 138240   ;;  %vm92_vm1 = vcmask 1040384   ;;  %s833_s0 = inlined_call_operand.vmem [shape: f32[128,17], index: 0, kind: input, shape index: {}]   ;;  %s834_s1 = inlined_call_operand.vmem [shape: s8[32,128], index: 1, kind: input, shape index: {}]   ;;  %s835_s2 = inlined_call_operand.vmem [shape: f32[17,128], index: 2, kind: input, shape index: {}]   ;;  %s836_s3 = inlined_call_operand.hbm [shape: f32[32,128], index: 3, kind: output, shape index: {}]  }
   0x1   :  { %v40_v0 = vld [vmem:[%s835_s2] sm:$0xff]  ;;  %v41_v1 = vld [vmem:[%s835_s2 + $0x8] sm:$0xff]  ;;  %v42_v4 = vld [vmem:[%s835_s2 + $0x10] sm:$0x1] }
   0x2   :  { %v559_v2 = vpack.c.bf16 %v41_v1, %v40_v0  ;;  %v24_v3 = vld [vmem:[%s833_s0] sm:$0xff]  ;;  %v25_v5 = vld [vmem:[%s833_s0 + $0x8] sm:$0xff] }
   0x3   :  { %515 = vmatprep.mubr.msk.f32.mxu0 %vm43_vm0, %v24_v3 }
   0x4   :  { %560 = vmatprep.subr.bf16.mxu0 %v559_v2 }
   0x5   :  { %562 = vmatpush3.bf16.msra.mxu0 %v559_v2 }
   0x6   :  { %513 = vmatprep.subr.msk.mxu0 %vm92_vm1, %v42_v4 }
   0x7   :  { %8 = vsyncpa [#allocation3], 0  ;;  %v26_v6 = vld [vmem:[%s833_s0 + $0x10] sm:$0xff]  ;;  %v27_v7 = vld [vmem:[%s833_s0 + $0x18] sm:$0xff]  ;;  %v241_v20 = vlaneseq }
   0x8   :  { %v28_v8 = vld [vmem:[%s833_s0 + $0x20] sm:$0xff]  ;;  %v29_v9 = vld [vmem:[%s833_s0 + $0x28] sm:$0xff]  ;;  %v30_v10 = vld [vmem:[%s833_s0 + $0x30] sm:$0xff] }
   0x9   :  { %514 = vmatpush3.msk.msra.mxu0 %vm92_vm1, %v42_v4  ;;  %v31_v11 = vld [vmem:[%s833_s0 + $0x38] sm:$0xff]  ;;  %v32_v12 = vld [vmem:[%s833_s0 + $0x40] sm:$0xff]  ;;  %v33_v13 = vld [vmem:[%s833_s0 + $0x48] sm:$0xff]  ;;  %v695_v21 = vand.u32 127, %v241_v20 }
   0xa   :  { %516 = vmatmul.mubr.msk.f32.vlgmr.msra.gmra.mrb[0].mxu0 %vm43_vm0, %v25_v5  ;;  %v34_v14 = vld [vmem:[%s833_s0 + $0x50] sm:$0xff]  ;;  %v35_v15 = vld [vmem:[%s833_s0 + $0x58] sm:$0xff]  ;;  %v36_v16 = vld [vmem:[%s833_s0 + $0x60] sm:$0xff] }
   0xb   :  { %518 = vmatprep.mubr.msk.f32.mxu0 %vm43_vm0, %v26_v6  ;;  %v37_v17 = vld [vmem:[%s833_s0 + $0x68] sm:$0xff]  ;;  %v38_v18 = vld [vmem:[%s833_s0 + $0x70] sm:$0xff]  ;;  %v39_v19 = vld [vmem:[%s833_s0 + $0x78] sm:$0xff]  ;;  %vm243_vm2 = vcmp.eq.s32.totalorder %v695_v21, 16 }
   0xc   :  { %v766_v54 = vld [vmem:[%s834_s1] sm:$0xff]  ;;  %s599_s1 = smov [#allocation2]  }
   0xd   :  { %v341_v55 = vunpack.c.l.s8.bf16 %v766_v54  ;;  %s452_s23 = sshll.u32 %s599_s1, 4  ;;  %s453_s23 = int_to_ptr.vmem [resolvable:$true] %s452_s23 }
   0xe   :  { %519 = vmatmul.mubr.msk.f32.gmra.mrb[2].mxu0 %vm43_vm0, %v27_v7  ;;  %s575_s2 = scalar_lea.vmem %s453_s23, 512  ;;  %p580_p1 = scmp.lt.s32.totalorder %s453_s23, %s453_s23 }
   0xf   :  { %521 = vmatprep.mubr.msk.f32.mxu0 %vm43_vm0, %v28_v8  ;;  %555 = vmatprep.mubr.bf16.mxu1 %v341_v55  ;;  %p576_p0 = scmp.ne.s32.totalorder %s453_s23, %s575_s2  ;;  %p581_p2 = scmp.lt.s32.totalorder %s575_s2, %s575_s2 }
  0x11   :  { %p582_p3 = por %p581_p2, %p580_p1 }
  0x12   :  { %522 = vmatmul.mubr.msk.f32.gmra.mrb[4].mxu0 %vm43_vm0, %v29_v9 }
  0x13   :  { %524 = vmatprep.mubr.msk.f32.mxu0 %vm43_vm0, %v30_v10  ;;  %p583_p4 = pnand %p582_p3, %p576_p0 }
  0x16   :  { %525 = vmatmul.mubr.msk.f32.gmra.mrb[6].mxu0 %vm43_vm0, %v31_v11 }
  0x17   :  { %527 = vmatprep.mubr.msk.f32.mxu0 %vm43_vm0, %v32_v12 }
  0x1a   :  { %528 = vmatmul.mubr.msk.f32.gmra.mrb[8].mxu0 %vm43_vm0, %v33_v13 }
  0x1b   :  { %530 = vmatprep.mubr.msk.f32.mxu0 %vm43_vm0, %v34_v14 }
  0x1e   :  { %531 = vmatmul.mubr.msk.f32.gmra.mrb[10].mxu0 %vm43_vm0, %v35_v15 }
  0x1f   :  { %533 = vmatprep.mubr.msk.f32.mxu0 %vm43_vm0, %v36_v16 }
  0x22   :  { %534 = vmatmul.mubr.msk.f32.gmra.mrb[12].mxu0 %vm43_vm0, %v37_v17 }
  0x23   :  { %536 = vmatprep.mubr.msk.f32.mxu0 %vm43_vm0, %v38_v18 }
  0x26   :  { %537 = vmatmul.mubr.msk.f32.gmra.mrb[14].mxu0 %vm43_vm0, %v39_v19 }
  0xdd   :  { %v517_v22 = vpop.f32.mrb[0].mxu0 }
  0xde   :  { %v162_v23 = vpop.f32.mrb[1].mxu0  ;;  %v245_v28 = vsel %vm243_vm2, %v517_v22, 0.0  ;;  %v293_v58 = vmax.f32 %v517_v22, 0.0 }
  0xdf   :  { %v244_v24 = vsel %vm243_vm2, %v162_v23, 0.0  ;;  %v292_v57 = vmax.f32 %v162_v23, 0.0 }
  0xe0   :  { %260 = vadd.xlane.f32.xlu0 %v244_v24 }
  0xe1   :  { %v520_v25 = vpop.f32.mrb[2].mxu0 }
  0xe2   :  { %v172_v26 = vpop.f32.mrb[3].mxu0  ;;  %v247_v27 = vsel %vm243_vm2, %v520_v25, 0.0  ;;  %v295_v61 = vmax.f32 %v520_v25, 0.0 }
  0xe3   :  { %266 = vadd.xlane.f32.xlu1 %v247_v27  ;;  %v246_v31 = vsel %vm243_vm2, %v172_v26, 0.0  ;;  %v294_v0 = vmax.f32 %v172_v26, 0.0 }
  0xe4   :  { %262 = vadd.xlane.f32.xlu0 %v245_v28 }
  0xe5   :  { %v704_v29 = vpop.f32.mrb[4].mxu0 }
  0xe6   :  { %v182_v30 = vpop.f32.mrb[5].mxu0  ;;  %v249_v33 = vsel %vm243_vm2, %v704_v29, 0.0  ;;  %v297_v9 = vmax.f32 %v704_v29, 0.0 }
  0xe7   :  { %264 = vadd.xlane.f32.xlu1 %v246_v31  ;;  %v248_v32 = vsel %vm243_vm2, %v182_v30, 0.0  ;;  %v296_v5 = vmax.f32 %v182_v30, 0.0 }
  0xe8   :  { %268 = vadd.xlane.f32.xlu0 %v248_v32 }
  0xe9   :  { %v713_v34 = vpop.f32.mrb[6].mxu0 }
  0xea   :  { %v715_v35 = vpop.f32.mrb[7].mxu0  ;;  %v251_v37 = vsel %vm243_vm2, %v713_v34, 0.0  ;;  %v299_v18 = vmax.f32 %v713_v34, 0.0 }
  0xeb   :  { %270 = vadd.xlane.f32.xlu1 %v249_v33  ;;  %v250_v36 = vsel %vm243_vm2, %v715_v35, 0.0  ;;  %v298_v15 = vmax.f32 %v715_v35, 0.0 }
  0xec   :  { %272 = vadd.xlane.f32.xlu0 %v250_v36 }
  0xed   :  { %v723_v38 = vpop.f32.mrb[8].mxu0 }
  0xee   :  { %v725_v39 = vpop.f32.mrb[9].mxu0  ;;  %v253_v41 = vsel %vm243_vm2, %v723_v38, 0.0  ;;  %v301_v28 = vmax.f32 %v723_v38, 0.0 }
  0xef   :  { %274 = vadd.xlane.f32.xlu1 %v251_v37  ;;  %v252_v40 = vsel %vm243_vm2, %v725_v39, 0.0  ;;  %v300_v25 = vmax.f32 %v725_v39, 0.0 }
  0xf0   :  { %276 = vadd.xlane.f32.xlu0 %v252_v40 }
  0xf1   :  { %v733_v42 = vpop.f32.mrb[10].mxu0 }
  0xf2   :  { %v735_v43 = vpop.f32.mrb[11].mxu0  ;;  %v255_v45 = vsel %vm243_vm2, %v733_v42, 0.0  ;;  %v303_v37 = vmax.f32 %v733_v42, 0.0 }
  0xf3   :  { %278 = vadd.xlane.f32.xlu1 %v253_v41  ;;  %v254_v44 = vsel %vm243_vm2, %v735_v43, 0.0  ;;  %v302_v34 = vmax.f32 %v735_v43, 0.0 }
  0xf4   :  { %280 = vadd.xlane.f32.xlu0 %v254_v44 }
  0xf5   :  { %v743_v46 = vpop.f32.mrb[12].mxu0 }
  0xf6   :  { %v745_v47 = vpop.f32.mrb[13].mxu0  ;;  %v257_v49 = vsel %vm243_vm2, %v743_v46, 0.0  ;;  %v305_v43 = vmax.f32 %v743_v46, 0.0 }
  0xf7   :  { %282 = vadd.xlane.f32.xlu1 %v255_v45  ;;  %v256_v48 = vsel %vm243_vm2, %v745_v47, 0.0  ;;  %v304_v45 = vmax.f32 %v745_v47, 0.0 }
  0xf8   :  { %284 = vadd.xlane.f32.xlu0 %v256_v48 }
  0xf9   :  { %v753_v50 = vpop.f32.mrb[14].mxu0 }
  0xfa   :  { %v755_v51 = vpop.f32.mrb[15].mxu0  ;;  %v259_v53 = vsel %vm243_vm2, %v753_v50, 0.0  ;;  %v307_v47 = vmax.f32 %v753_v50, 0.0  ;;  %v342_v50 = vunpack.c.h.s8.bf16 %v766_v54 }
  0xfb   :  { %286 = vadd.xlane.f32.xlu1 %v257_v49  ;;  %v258_v52 = vsel %vm243_vm2, %v755_v51, 0.0 }
  0xfc   :  { %288 = vadd.xlane.f32.xlu0 %v258_v52 }
  0xff   :  { %290 = vadd.xlane.f32.xlu1 %v259_v53 }
 0x16d   :  { %v261_v56 = vpop.xlane.xlu0 %260 }
 0x16e   :  { %v308_v59 = vmul.f32 %v292_v57, %v261_v56  ;;  %v306_v57 = vmax.f32 %v755_v51, 0.0 }
 0x170   :  { %v267_v60 = vpop.xlane.xlu1 %266  ;;  %v324_v2 = vsel %vm243_vm2, %v261_v56, %v308_v59 }
 0x171   :  { %v263_v62 = vpop.xlane.xlu0 %262  ;;  %v311_v1 = vmul.f32 %v295_v61, %v267_v60 }
 0x172   :  { %v309_v63 = vmul.f32 %v293_v58, %v263_v62 }
 0x173   :  { %v327_v10 = vsel %vm243_vm2, %v267_v60, %v311_v1 }
 0x174   :  { %v325_v3 = vsel %vm243_vm2, %v263_v62, %v309_v63  ;;  %v265_v4 = vpop.xlane.xlu1 %264 }
 0x175   :  { %v310_v6 = vmul.f32 %v294_v0, %v265_v4  ;;  %v269_v7 = vpop.xlane.xlu0 %268  ;;  %v347_v8 = vpack.c.bf16 %v325_v3, %v324_v2 }
 0x176   :  { %v312_v12 = vmul.f32 %v296_v5, %v269_v7 }
 0x177   :  { %v326_v11 = vsel %vm243_vm2, %v265_v4, %v310_v6  ;;  %539 = vmatprep.subr.bf16.mxu1 %v347_v8 }
 0x178   :  { %v348_v13 = vpack.c.bf16 %v327_v10, %v326_v11  ;;  %540 = vmatpush3.bf16.msra.mxu1 %v347_v8  ;;  %v271_v14 = vpop.xlane.xlu1 %270  ;;  %v328_v19 = vsel %vm243_vm2, %v269_v7, %v312_v12 }
 0x179   :  { %v313_v16 = vmul.f32 %v297_v9, %v271_v14  ;;  %v273_v17 = vpop.xlane.xlu0 %272 }
 0x17a   :  { %541 = vmatprep.subr.bf16.mxu1 %v348_v13  ;;  %v314_v22 = vmul.f32 %v298_v15, %v273_v17 }
 0x17b   :  { %v329_v20 = vsel %vm243_vm2, %v271_v14, %v313_v16 }
 0x17c   :  { %v349_v23 = vpack.c.bf16 %v329_v20, %v328_v19  ;;  %542 = vmatpush3.bf16.msra.mxu1 %v348_v13  ;;  %v275_v24 = vpop.xlane.xlu1 %274  ;;  %v330_v29 = vsel %vm243_vm2, %v273_v17, %v314_v22 }
 0x17d   :  { %v315_v26 = vmul.f32 %v299_v18, %v275_v24  ;;  %v277_v27 = vpop.xlane.xlu0 %276 }
 0x17e   :  { %543 = vmatprep.subr.bf16.mxu1 %v349_v23  ;;  %v316_v31 = vmul.f32 %v300_v25, %v277_v27 }
 0x17f   :  { %v331_v30 = vsel %vm243_vm2, %v275_v24, %v315_v26 }
 0x180   :  { %v350_v32 = vpack.c.bf16 %v331_v30, %v330_v29  ;;  %544 = vmatpush3.bf16.msra.mxu1 %v349_v23  ;;  %v279_v33 = vpop.xlane.xlu1 %278  ;;  %v332_v38 = vsel %vm243_vm2, %v277_v27, %v316_v31 }
 0x181   :  { %v317_v35 = vmul.f32 %v301_v28, %v279_v33  ;;  %v281_v36 = vpop.xlane.xlu0 %280 }
 0x182   :  { %545 = vmatprep.subr.bf16.mxu1 %v350_v32  ;;  %v318_v40 = vmul.f32 %v302_v34, %v281_v36 }
 0x183   :  { %v333_v39 = vsel %vm243_vm2, %v279_v33, %v317_v35 }
 0x184   :  { %v351_v41 = vpack.c.bf16 %v333_v39, %v332_v38  ;;  %546 = vmatpush3.bf16.msra.mxu1 %v350_v32  ;;  %v283_v44 = vpop.xlane.xlu1 %282  ;;  %v334_v42 = vsel %vm243_vm2, %v281_v36, %v318_v40 }
 0x185   :  { %v319_v48 = vmul.f32 %v303_v37, %v283_v44  ;;  %v285_v49 = vpop.xlane.xlu0 %284 }
 0x186   :  { %547 = vmatprep.subr.bf16.mxu1 %v351_v41  ;;  %v320_v53 = vmul.f32 %v304_v45, %v285_v49 }
 0x187   :  { %v335_v52 = vsel %vm243_vm2, %v283_v44, %v319_v48 }
 0x188   :  { %v352_v55 = vpack.c.bf16 %v335_v52, %v334_v42  ;;  %548 = vmatpush3.bf16.msra.mxu1 %v351_v41  ;;  %v287_v56 = vpop.xlane.xlu1 %286  ;;  %v336_v46 = vsel %vm243_vm2, %v285_v49, %v320_v53 }
 0x189   :  { %v321_v58 = vmul.f32 %v305_v43, %v287_v56  ;;  %v289_v59 = vpop.xlane.xlu0 %288 }
 0x18a   :  { %549 = vmatprep.subr.bf16.mxu1 %v352_v55  ;;  %v322_v61 = vmul.f32 %v306_v57, %v289_v59 }
 0x18b   :  { %v337_v60 = vsel %vm243_vm2, %v287_v56, %v321_v58 }
 0x18c   :  { %v353_v62 = vpack.c.bf16 %v337_v60, %v336_v46  ;;  %550 = vmatpush3.bf16.msra.mxu1 %v352_v55  ;;  %v291_v63 = vpop.xlane.xlu1 %290  ;;  %v338_v51 = vsel %vm243_vm2, %v289_v59, %v322_v61 }
 0x18d   :  { %v323_v0 = vmul.f32 %v307_v47, %v291_v63 }
 0x18e   :  { %551 = vmatprep.subr.bf16.mxu1 %v353_v62 }
 0x18f   :  { %v339_v1 = vsel %vm243_vm2, %v291_v63, %v323_v0 }
 0x190   :  { %v354_v2 = vpack.c.bf16 %v339_v1, %v338_v51  ;;  %552 = vmatpush3.bf16.msra.mxu1 %v353_v62 }
 0x192   :  { %553 = vmatprep.subr.bf16.mxu1 %v354_v2 }
 0x194   :  { %554 = vmatpush3.bf16.msra.mxu1 %v354_v2 }
 0x197   :  { %556 = vmatmul.mubr.bf16.vlgmr.msra.gmra.mrb[0].mxu1 %v342_v50 }
 0x26a   :  { %v557_v3 = vpop.f32.mrb[0].mxu1 }
 0x26b   :  { %v389_v4 = vpop.f32.mrb[1].mxu1  ;;  %v421_v9 = vsel %vm243_vm2, %v557_v3, 0.0 }
 0x26c   :  { %v558_v5 = vpop.f32.mrb[2].mxu1  ;;  %v419_v7 = vsel %vm243_vm2, %v389_v4, 0.0 }
 0x26d   :  { %v392_v6 = vpop.f32.mrb[3].mxu1  ;;  %423 = vadd.xlane.f32.xlu0 %v419_v7  ;;  %v422_v54 = vsel %vm243_vm2, %v558_v5, 0.0 }
 0x26e   :  { %v420_v8 = vsel %vm243_vm2, %v392_v6, 0.0 }
 0x26f   :  { %425 = vadd.xlane.f32.xlu1 %v420_v8 }
 0x271   :  { %427 = vadd.xlane.f32.xlu0 %v421_v9 }
 0x273   :  { %429 = vadd.xlane.f32.xlu1 %v422_v54 }
 0x2fa   :  { %v424_v10 = vpop.xlane.xlu0 %423 }
 0x2fb   :  { %v431_v11 = vadd.f32 1e-06, %v424_v10 }
 0x2fc   :  { %v426_v12 = vpop.xlane.xlu1 %425 }
 0x2fd   :  { %567 = vrcp.f32 %v431_v11  ;;  %v432_v13 = vadd.f32 1e-06, %v426_v12 }
 0x2fe   :  { %v428_v14 = vpop.xlane.xlu0 %427 }
 0x2ff   :  { %569 = vrcp.f32 %v432_v13  ;;  %v433_v15 = vadd.f32 1e-06, %v428_v14 }
 0x300   :  { %v430_v16 = vpop.xlane.xlu1 %429 }
 0x301   :  { %571 = vrcp.f32 %v433_v15  ;;  %v434_v17 = vadd.f32 1e-06, %v430_v16 }
 0x303   :  { %573 = vrcp.f32 %v434_v17 }
 0x307   :  { %v568_v18 = vpop.eup %567 }
 0x308   :  { %v436_v19 = vmul.f32 %v568_v18, %v389_v4 }
 0x309   :  { %v570_v20 = vpop.eup %569 }
 0x30a   :  { %443 = vst [vmem:[#allocation2] sm:$0xff] %v436_v19  ;;  %v438_v22 = vmul.f32 %v570_v20, %v392_v6 }
 0x30b   :  { %v572_v21 = vpop.eup %571 }
 0x30c   :  { %444 = vst [vmem:[#allocation2 + $0x8] sm:$0xff] %v438_v22  ;;  %v440_v23 = vmul.f32 %v572_v21, %v557_v3 }
 0x30d   :  { %v574_v24 = vpop.eup %573 }
 0x30e   :  { %445 = vst [vmem:[#allocation2 + $0x10] sm:$0xff] %v440_v23  ;;  %v442_v25 = vmul.f32 %v574_v24, %v558_v5 }
 0x310   :  { %446 = vst [vmem:[#allocation2 + $0x18] sm:$0xff] %v442_v25 }
 0x311   :  { %586 = shalt.err (!%p583_p4)
}
 0x312   :  { %s587_s26 = scalar_lea.hbm %s836_s3, 512 }
 0x313   :  { %p588_p5 = scmp.ne.s32.totalorder %s836_s3, %s587_s26  ;;  %p591_p6 = scmp.lt.u32.totalorder %s587_s26, %s836_s3 }
 0x315   :  { %p593_p7 = pnand %p591_p6, %p588_p5 }
 0x317   :  { %596 = shalt.err (!%p593_p7)
}
 0x318   :  { %s600_s4 = smov 128   ;;  %s601_s5 = smov 8  }
 0x319   :  { %458 = dma.vmem_to_hbm [thread:$0]  %s453_s23, 512, %s836_s3, [#allocation3], %s600_s4, %s600_s4, %s601_s5  }
 0x31a   :  { %597 = dma.done.wait [#allocation3], 512  }
 0x31b   :  { %598 = vsyncadd [#allocation3], 4294966784 }
 0x31c   :  { %462 = vsyncpa [#allocation3], 1 }

</bundles_post_ra>
